<compile_context>
chip_gen: v7x
topology: tpu7x:2x2x1
jax: 0.10.0
libtpu: 0.0.40
codegen_flags: <defaults>
</compile_context>

<pallas_src>
import functools

import jax
import jax.numpy as jnp
from jax.experimental import pallas as pl
from jax.experimental.pallas import tpu as pltpu

ALPHA = 1.0
GAMMA = 7  # integer power, expanded as w^7 = w4 * w2 * w

# Total VMEM-resident bytes targeted per grid step (double-buffered inputs +
# estimated live temporaries).  Kept well under v5e's 16 MiB scoped default.
_VMEM_TILE_BUDGET = 12 * 1024 * 1024
_MAX_TILE_ROWS = 32768


def focal_loss_kernel(logits_ref, targets_ref, out_ref, *, n_valid, tile_n):
    i = pl.program_id(0)

    x = logits_ref[...]                                       # (tile_n, C) native dtype
    tgt = targets_ref[...]                                    # (tile_n, 1) int32
    tn, c = x.shape

    # Numerically-stable log-sum-exp per row (== CrossEntropyLoss internals).
    xf = x.astype(jnp.float32)
    row_max = jnp.max(xf, axis=-1, keepdims=True)             # (tile_n, 1)
    sum_exp = jnp.sum(jnp.exp(xf - row_max), axis=-1, keepdims=True)
    log_sum = jnp.log(sum_exp)                                # (tile_n, 1)

    # Gather the target-class logit from the RAW logits (native dtype compare
    # + select; exactly one nonzero per row, so the row-sum is exact even in
    # bf16), then accumulate in f32.
    class_ids = jax.lax.broadcasted_iota(jnp.int32, (tn, c), 1)
    sel = jnp.where(class_ids == tgt, x, jnp.zeros_like(x))
    tgt_logit = jnp.sum(sel, axis=-1, keepdims=True).astype(jnp.float32)

    # ce >= 0 mathematically; clamp protects against rounding -> pt > 1.
    ce = jnp.maximum(log_sum + row_max - tgt_logit, 0.0)      # (tile_n, 1)
    pt = jnp.exp(-ce)
    w = 1.0 - pt
    w2 = w * w
    w4 = w2 * w2
    focal = ALPHA * (w4 * w2 * w) * ce                        # (1 - pt)^7 * ce

    # Lane-dense (8, 128) output block: partial sum at [0, 0], zeros elsewhere.
    sub = jax.lax.broadcasted_iota(jnp.int32, (8, 128), 0)
    lane = jax.lax.broadcasted_iota(jnp.int32, (8, 128), 1)
    pos00 = (sub == 0) & (lane == 0)

    last = pl.num_programs(0) - 1

    @pl.when(i < last)
    def _():
        out_ref[...] = jnp.where(pos00, jnp.sum(focal), 0.0)

    @pl.when(i == last)
    def _():
        # Only the last (possibly partial) tile pays for the tail masking.
        row_ids = jax.lax.broadcasted_iota(jnp.int32, (tn, 1), 0)
        valid = row_ids < (n_valid - i * tile_n)
        masked = jnp.where(valid, focal, 0.0)
        out_ref[...] = jnp.where(pos00, jnp.sum(masked), 0.0)


def _pick_tile_n(n, c, itemsize):
    """Largest multiple-of-8 row count whose VMEM-resident footprint fits."""
    c_pad = pl.cdiv(c, 128) * 128                 # lane-padded class dim
    logits_row = c_pad * itemsize                 # one logits buffer, per row
    targets_row = 128 * 4                         # (tile_n, 1) int32 lane-padded
    temps_row = 3 * c_pad * 4                     # ~3 live f32 (tile_n, C) temps
    per_row = 2 * logits_row + 2 * targets_row + temps_row   # 2x = double buffer

    tile_n = _VMEM_TILE_BUDGET // per_row
    tile_n = min(tile_n, _MAX_TILE_ROWS)
    tile_n = max((tile_n // 8) * 8, 8)

    # Guarantee >= 2 grid steps when possible so v7x's two TensorCores both
    # get work on the "parallel" batch axis (also exercises the pipeline).
    if tile_n >= n and n > 8:
        half = -(-n // 2)
        tile_n = -(-half // 8) * 8

    n_round8 = -(-n // 8) * 8
    tile_n = min(tile_n, n_round8)
    return max(tile_n, 8)


def focal_loss(logits, targets):
    """logits: (N, C) float32/bfloat16, targets: (N,) int -> scalar float32."""
    n, c = logits.shape
    itemsize = jnp.dtype(logits.dtype).itemsize
    tile_n = _pick_tile_n(n, c, itemsize)
    num_tiles = pl.cdiv(n, tile_n)

    # No padding of logits: partial last block + in-kernel mask handle the tail.
    targets_2d = targets.astype(jnp.int32).reshape(n, 1)

    kernel = functools.partial(focal_loss_kernel, n_valid=n, tile_n=tile_n)

    partials = pl.pallas_call(
        kernel,
        out_shape=jax.ShapeDtypeStruct((num_tiles * 8, 128), jnp.float32),
        grid_spec=pltpu.PrefetchScalarGridSpec(
            num_scalar_prefetch=0,
            grid=(num_tiles,),
            in_specs=[
                pl.BlockSpec((tile_n, c), lambda i: (i, 0)),
                pl.BlockSpec((tile_n, 1), lambda i: (i, 0)),
            ],
            out_specs=pl.BlockSpec((8, 128), lambda i: (i, 0)),
        ),
        compiler_params=pltpu.CompilerParams(
            dimension_semantics=("parallel",),
            vmem_limit_bytes=32 * 1024 * 1024,
        ),
    )(logits, targets_2d)

    # reduction='mean' over the true batch size.
    return jnp.sum(partials) / n


def focal_loss_ref(logits, targets):
    """Pure-JAX reference mirroring the PyTorch module."""
    logits = logits.astype(jnp.float32)
    lse = jax.nn.logsumexp(logits, axis=-1)
    tgt_logit = jnp.take_along_axis(
        logits, targets[:, None].astype(jnp.int32), axis=-1
    )[:, 0]
    ce = lse - tgt_logit
    pt = jnp.exp(-ce)
    focal = ALPHA * (1.0 - pt) ** GAMMA * ce
    return jnp.mean(focal)


if __name__ == "__main__":
    key = jax.random.PRNGKey(0)

    cases = [
        (8, 16, jnp.float32),     # small, 8-aligned batch, single tile
        (10, 32, jnp.float32),    # non-aligned batch -> 2 tiles, masked tail
        (300, 21, jnp.float32),   # 2 tiles, partial last tile, C not 128-aligned
        (64, 30, jnp.bfloat16),   # bf16 logits path (native-dtype gather)
    ]

    for idx, (n, c, dt) in enumerate(cases):
        key, k1, k2 = jax.random.split(key, 3)
        logits = (jax.random.normal(k1, (n, c), dtype=jnp.float32) * 2.0).astype(dt)
        targets = jax.random.randint(k2, (n,), 0, c, dtype=jnp.int32)

        out = focal_loss(logits, targets)
        jax.block_until_ready(out)
        ref = focal_loss_ref(logits, targets)
        assert jnp.allclose(out, ref, atol=1e-5, rtol=1e-4), (idx, out, ref)

    print("KERNEL_OK")
</pallas_src>

<mosaic_0001>
module attributes {stable_mosaic.version = 11 : i64} {
  func.func @focal_loss_kernel(%arg0: i32, %arg1: memref<8x16xf32, #tpu.memory_space<vmem>>, %arg2: memref<8x1xi32, #tpu.memory_space<vmem>>, %arg3: memref<8x128xf32, #tpu.memory_space<vmem>>) attributes {dimension_semantics = [#tpu.dimension_semantics<parallel>], iteration_bounds = array<i64: 1>, scalar_prefetch = 0 : i64, scratch_operands = 0 : i64, tpu.core_type = #tpu.core_type<tc>, window_params = [{transform_indices = @transform_0, window_bounds = array<i64: 8, 16>}, {transform_indices = @transform_1, window_bounds = array<i64: 8, 1>}, {transform_indices = @transform_2, window_bounds = array<i64: 8, 128>}]} {
    %c0 = arith.constant 0 : index
    %c0_0 = arith.constant 0 : index
    %0 = vector.load %arg1[%c0, %c0_0] : memref<8x16xf32, #tpu.memory_space<vmem>>, vector<8x16xf32>
    %c0_1 = arith.constant 0 : index
    %c0_2 = arith.constant 0 : index
    %1 = vector.load %arg2[%c0_1, %c0_2] : memref<8x1xi32, #tpu.memory_space<vmem>>, vector<8x1xi32>
    %cst = arith.constant dense<0xFF800000> : vector<8xf32>
    %2 = vector.multi_reduction <maximumf>, %0, %cst [1] : vector<8x16xf32> to vector<8xf32>
    %3 = vector.shape_cast %2 : vector<8xf32> to vector<8x1xf32>
    %4 = vector.broadcast %3 : vector<8x1xf32> to vector<8x16xf32>
    %5 = arith.subf %0, %4 : vector<8x16xf32>
    %6 = math.exp %5 : vector<8x16xf32>
    %cst_3 = arith.constant dense<0.000000e+00> : vector<8xf32>
    %7 = vector.multi_reduction <add>, %6, %cst_3 [1] : vector<8x16xf32> to vector<8xf32>
    %8 = vector.shape_cast %7 : vector<8xf32> to vector<8x1xf32>
    %9 = math.log %8 : vector<8x1xf32>
    %10 = tpu.iota {dimensions = array<i32: 1>} : vector<8x16xi32>
    %11 = vector.broadcast %1 : vector<8x1xi32> to vector<8x16xi32>
    %12 = arith.cmpi eq, %10, %11 : vector<8x16xi32>
    %cst_4 = arith.constant 0.000000e+00 : f32
    %13 = vector.broadcast %cst_4 : f32 to vector<8x16xf32>
    %14 = arith.select %12, %0, %13 : vector<8x16xi1>, vector<8x16xf32>
    %cst_5 = arith.constant dense<0.000000e+00> : vector<8xf32>
    %15 = vector.multi_reduction <add>, %14, %cst_5 [1] : vector<8x16xf32> to vector<8xf32>
    %16 = vector.shape_cast %15 : vector<8xf32> to vector<8x1xf32>
    %17 = arith.addf %9, %3 : vector<8x1xf32>
    %18 = arith.subf %17, %16 : vector<8x1xf32>
    %cst_6 = arith.constant 0.000000e+00 : f32
    %19 = vector.broadcast %cst_6 : f32 to vector<8x1xf32>
    %20 = arith.maximumf %18, %19 : vector<8x1xf32>
    %cst_7 = arith.constant 0.000000e+00 : f32
    %21 = vector.broadcast %cst_7 : f32 to vector<8x1xf32>
    %22 = arith.subf %21, %20 : vector<8x1xf32>
    %23 = math.exp %22 : vector<8x1xf32>
    %cst_8 = arith.constant 1.000000e+00 : f32
    %24 = vector.broadcast %cst_8 : f32 to vector<8x1xf32>
    %25 = arith.subf %24, %23 : vector<8x1xf32>
    %26 = arith.mulf %25, %25 : vector<8x1xf32>
    %27 = arith.mulf %26, %26 : vector<8x1xf32>
    %28 = arith.mulf %27, %26 : vector<8x1xf32>
    %29 = arith.mulf %28, %25 : vector<8x1xf32>
    %cst_9 = arith.constant 1.000000e+00 : f32
    %30 = vector.broadcast %cst_9 : f32 to vector<8x1xf32>
    %31 = arith.mulf %30, %29 : vector<8x1xf32>
    %32 = arith.mulf %31, %20 : vector<8x1xf32>
    %33 = tpu.iota {dimensions = array<i32: 0>} : vector<8x128xi32>
    %34 = tpu.iota {dimensions = array<i32: 1>} : vector<8x128xi32>
    %c0_i32 = arith.constant 0 : i32
    %35 = vector.broadcast %c0_i32 : i32 to vector<8x128xi32>
    %36 = arith.cmpi eq, %33, %35 : vector<8x128xi32>
    %c0_i32_10 = arith.constant 0 : i32
    %37 = vector.broadcast %c0_i32_10 : i32 to vector<8x128xi32>
    %38 = arith.cmpi eq, %34, %37 : vector<8x128xi32>
    %39 = arith.andi %36, %38 : vector<8x128xi1>
    %c0_i32_11 = arith.constant 0 : i32
    %40 = arith.cmpi slt, %arg0, %c0_i32_11 : i32
    %41 = arith.extui %40 : i1 to i32
    %c0_i32_12 = arith.constant 0 : i32
    %42 = arith.cmpi ne, %41, %c0_i32_12 : i32
    scf.if %42 {
      %46 = vector.shape_cast %32 : vector<8x1xf32> to vector<1x8x1xf32>
      %cst_15 = arith.constant dense<0.000000e+00> : vector<1xf32>
      %47 = vector.multi_reduction <add>, %46, %cst_15 [1, 2] : vector<1x8x1xf32> to vector<1xf32>
      %48 = vector.shape_cast %47 : vector<1xf32> to vector<1x1x1xf32>
      %49 = vector.extract %48[0, 0, 0] : f32 from vector<1x1x1xf32>
      %cst_16 = arith.constant 0.000000e+00 : f32
      %50 = vector.broadcast %49 : f32 to vector<8x128xf32>
      %51 = vector.broadcast %cst_16 : f32 to vector<8x128xf32>
      %52 = arith.select %39, %50, %51 : vector<8x128xi1>, vector<8x128xf32>
      %c0_17 = arith.constant 0 : index
      %c0_18 = arith.constant 0 : index
      %53 = vector.load %arg3[%c0_17, %c0_18] : memref<8x128xf32, #tpu.memory_space<vmem>>, vector<8x128xf32>
      tpu.vector_store %arg3[%c0_17, %c0_18], %52 {strides = array<i32>} : memref<8x128xf32, #tpu.memory_space<vmem>>, vector<8x128xf32>,
    } else {
    }
    %c0_i32_13 = arith.constant 0 : i32
    %43 = arith.cmpi eq, %arg0, %c0_i32_13 : i32
    %44 = arith.extui %43 : i1 to i32
    %c0_i32_14 = arith.constant 0 : i32
    %45 = arith.cmpi ne, %44, %c0_i32_14 : i32
    scf.if %45 {
      %46 = tpu.iota {dimensions = array<i32: 0>} : vector<8x1xi32>
      %c8_i32 = arith.constant 8 : i32
      %47 = arith.muli %arg0, %c8_i32 : i32
      %c8_i32_15 = arith.constant 8 : i32
      %48 = arith.subi %c8_i32_15, %47 : i32
      %49 = vector.broadcast %48 : i32 to vector<8x1xi32>
      %50 = arith.cmpi slt, %46, %49 : vector<8x1xi32>
      %cst_16 = arith.constant 0.000000e+00 : f32
      %51 = vector.broadcast %cst_16 : f32 to vector<8x1xf32>
      %52 = arith.select %50, %32, %51 : vector<8x1xi1>, vector<8x1xf32>
      %53 = vector.shape_cast %52 : vector<8x1xf32> to vector<1x8x1xf32>
      %cst_17 = arith.constant dense<0.000000e+00> : vector<1xf32>
      %54 = vector.multi_reduction <add>, %53, %cst_17 [1, 2] : vector<1x8x1xf32> to vector<1xf32>
      %55 = vector.shape_cast %54 : vector<1xf32> to vector<1x1x1xf32>
      %56 = vector.extract %55[0, 0, 0] : f32 from vector<1x1x1xf32>
      %cst_18 = arith.constant 0.000000e+00 : f32
      %57 = vector.broadcast %56 : f32 to vector<8x128xf32>
      %58 = vector.broadcast %cst_18 : f32 to vector<8x128xf32>
      %59 = arith.select %39, %57, %58 : vector<8x128xi1>, vector<8x128xf32>
      %c0_19 = arith.constant 0 : index
      %c0_20 = arith.constant 0 : index
      %60 = vector.load %arg3[%c0_19, %c0_20] : memref<8x128xf32, #tpu.memory_space<vmem>>, vector<8x128xf32>
      tpu.vector_store %arg3[%c0_19, %c0_20], %59 {strides = array<i32>} : memref<8x128xf32, #tpu.memory_space<vmem>>, vector<8x128xf32>,
    } else {
    }
    return
  }
  func.func @transform_0(%arg0: i32) -> (i32, i32) {
    %c0_i32 = arith.constant 0 : i32
    %c0_i32_0 = arith.constant 0 : i32
    return %arg0, %c0_i32 : i32, i32
  }
  func.func @transform_1(%arg0: i32) -> (i32, i32) {
    %c0_i32 = arith.constant 0 : i32
    %c0_i32_0 = arith.constant 0 : i32
    return %arg0, %c0_i32 : i32, i32
  }
  func.func @transform_2(%arg0: i32) -> (i32, i32) {
    %c0_i32 = arith.constant 0 : i32
    %c0_i32_0 = arith.constant 0 : i32
    return %arg0, %c0_i32 : i32, i32
  }
}

</mosaic_0001>

<bundles_post_ra>
// kernel: tpu_custom_call.1
= control target key start
LH: loop header
LB: loop body
LE: loop exit
PB: predicated region body
PF: predicated region fallthrough
CT: control target
= control target key end

     0   :  { %vm14_vm0 = vcmask 130048   ;;  %s181_s0 = inlined_call_operand.vmem [shape: f32[8,16], index: 0, kind: input, shape index: {}]   ;;  %s182_s1 = inlined_call_operand.vmem [shape: s32[8,1], index: 1, kind: input, shape index: {}]   ;;  %s183_s2 = inlined_call_operand.hbm [shape: f32[8,128], index: 2, kind: output, shape index: {}]  }
   0x1   :  { %v12_v0 = vld [vmem:[%s181_s0] sm:$0xff] }
   0x2   :  { %7 = vsyncpa [#allocation3], 0  ;;  %v15_v1 = vsel %vm14_vm0, %v12_v0, -inf  ;;  %v143_v2 = vmov 0   ;;  %v13_v3 = vld [vmem:[%s182_s1] sm:$0xff]  ;;  %v26_v7 = vlaneseq  ;;  %vm80_vm2 = vcmask 7168  }
   0x3   :  { %112 = vset.pattern.permute.xlu0 %v143_v2  ;;  %s144_s0 = smov [#allocation2]  }
   0x4   :  { %16 = vmax.xlane.f32.xlu0 %v15_v1  ;;  %v27_v8 = vand.u32 127, %v26_v7  ;;  %v49_v38 = vshrl.u32 %v26_v7, 7  ;;  %s100_s1 = sshll.u32 %s144_s0, 4  ;;  %s101_s1 = int_to_ptr.vmem [resolvable:$true] %s100_s1 }
   0x5   :  { %s119_s14 = scalar_lea.vmem %s101_s1, 128  ;;  %p124_p1 = scmp.lt.s32.totalorder %s101_s1, %s101_s1 }
   0x6   :  { %vm50_vm3 = vcmp.eq.s32.totalorder %v49_v38, 0  ;;  %vm51_vm4 = vcmp.eq.s32.totalorder %v27_v8, 0  ;;  %p120_p0 = scmp.ne.s32.totalorder %s101_s1, %s119_s14  ;;  %p125_p2 = scmp.lt.s32.totalorder %s119_s14, %s119_s14 }
   0x7   :  { %vm52_vm5 = vmand %vm50_vm3, %vm51_vm4 }
   0x8   :  { %p126_p3 = por %p125_p2, %p124_p1 }
   0xa   :  { %p127_p4 = pnand %p126_p3, %p120_p0 }
  0x1a   :  { %29 = vperm.xlu0 %112, %v13_v3  }
  0x91   :  { %v17_v4 = vpop.xlane.xlu0 %16 }
  0x92   :  { %v18_v5 = vsub.f32 %v12_v0, %v17_v4 }
  0x94   :  { %v19_v6 = vmul.f32 1.442695, %v18_v5 }
  0x96   :  { %113 = vpow2.f32 %v19_v6 }
  0x99   :  { %v30_v9 = vpop.permute.xlu0 %29 }
  0x9a   :  { %vm31_vm1 = vcmp.eq.s32.totalorder %v27_v8, %v30_v9 }
  0x9b   :  { %v32_v11 = vsel %vm31_vm1, %v12_v0, 0.0 }
  0x9c   :  { %v33_v13 = vsel %vm14_vm0, %v32_v11, 0.0 }
  0xa0   :  { %v114_v10 = vpop.eup %113 }
  0xa1   :  { %v21_v12 = vsel %vm14_vm0, %v114_v10, 0.0 }
  0xa2   :  { %22 = vadd.xlane.f32.xlu1 %v21_v12 }
  0xa6   :  { %34 = vadd.xlane.f32.xlu1 %v33_v13 }
 0x12f   :  { %v23_v14 = vpop.xlane.xlu1 %22 }
 0x130   :  { %115 = vlog2.f32 %v23_v14 }
 0x133   :  { %v35_v17 = vpop.xlane.xlu1 %34 }
 0x13a   :  { %v116_v15 = vpop.eup %115 }
 0x13b   :  { %v25_v16 = vmul.f32 0.6931472, %v116_v15 }
 0x13d   :  { %v36_v18 = vadd.f32 %v25_v16, %v17_v4 }
 0x13f   :  { %v37_v19 = vsub.f32 %v36_v18, %v35_v17 }
 0x141   :  { %v38_v20 = vmax.f32 %v37_v19, 0.0 }
 0x143   :  { %v39_v21 = vsub.f32 0.0, %v38_v20 }
 0x145   :  { %v40_v22 = vmul.f32 1.442695, %v39_v21 }
 0x147   :  { %117 = vpow2.f32 %v40_v22 }
 0x151   :  { %v118_v23 = vpop.eup %117 }
 0x152   :  { %v42_v24 = vsub.f32 1.0, %v118_v23 }
 0x154   :  { %v43_v25 = vmul.f32 %v42_v24, %v42_v24 }
 0x156   :  { %v44_v26 = vmul.f32 %v43_v25, %v43_v25 }
 0x158   :  { %v45_v27 = vmul.f32 %v44_v26, %v43_v25 }
 0x15a   :  { %v46_v28 = vmul.f32 %v45_v27, %v42_v24 }
 0x15c   :  { %v47_v29 = vmul.f32 %v46_v28, %v38_v20 }
 0x15e   :  { %v81_v30 = vsel %vm80_vm2, %v47_v29, 0.0 }
 0x15f   :  { %82 = vadd.xlane.f32.xlu1 %v81_v30 }
 0x1ec   :  { %v83_v31 = vpop.xlane.xlu1 %82 }
 0x1ed   :  { %v84_v32 = vrot.slane %v83_v31, 4 }
 0x1ef   :  { %v85_v33 = vadd.f32 %v84_v32, %v83_v31 }
 0x1f1   :  { %v86_v34 = vrot.slane %v85_v33, 2 }
 0x1f3   :  { %v87_v35 = vadd.f32 %v86_v34, %v85_v33 }
 0x1f5   :  { %v88_v36 = vrot.slane %v87_v35, 1 }
 0x1f7   :  { %v89_v37 = vadd.f32 %v88_v36, %v87_v35 }
 0x1f9   :  { %108 = vpush %v89_v37 }
 0x22a   :  { %s109_s13 = spop %108 }
 0x22b   :  { %v91_v39 = vstv %s109_s13 }
 0x22c   :  { %v92_v40 = vsel %vm52_vm5, %v91_v39, 0.0 }
 0x22d   :  { %93 = vst [vmem:[#allocation2] sm:$0xff] %v92_v40 }
 0x22e   :  { %130 = shalt.err (!%p127_p4)
}
 0x22f   :  { %s131_s17 = scalar_lea.hbm %s183_s2, 128 }
 0x230   :  { %p132_p5 = scmp.ne.s32.totalorder %s183_s2, %s131_s17  ;;  %p135_p6 = scmp.lt.u32.totalorder %s131_s17, %s183_s2 }
 0x232   :  { %p137_p7 = pnand %p135_p6, %p132_p5 }
 0x234   :  { %140 = shalt.err (!%p137_p7)
}
 0x235   :  { %103 = dma.vmem_to_hbm [thread:$0]  %s101_s1, 128, %s183_s2, [#allocation3]  }
 0x236   :  { %141 = dma.done.wait [#allocation3], 128  }
 0x237   :  { %142 = vsyncadd [#allocation3], 4294967168 }
 0x238   :  { %107 = vsyncpa [#allocation3], 1 }

</bundles_post_ra>
